<compile_context>
chip_gen: v6e
topology: v6e:2x2x1
jax: 0.10.0
libtpu: 0.0.40
codegen_flags: <defaults>
</compile_context>

<pallas_src>
import functools

import jax
import jax.numpy as jnp
from jax.experimental import pallas as pl
from jax.experimental.pallas import tpu as pltpu

_LANE = 128


def _round_up(x, m):
    return ((x + m - 1) // m) * m


def _pick_tiles(n):
    """Return (padded N, row tile TM, reduction tile TK)."""
    if n <= 512:
        npad = _round_up(n, 8)
        # single K block; TK == full (padded) N is layout-legal even if < 128
        return npad, npad, npad
    tm, tk = 256, 512
    return _round_up(n, 512), tm, tk


def _pad2(x, rows, cols):
    r, c = x.shape
    return jnp.pad(x.astype(jnp.float32), ((0, rows - r), (0, cols - c)))


def _fold_layer(ws, bs, wn, bn, wu, bu, wl, bl, fin_pad, fout_pad):
    """Fold the trailing linear into the three branch linears (done offline, f32)."""
    wcat = jnp.concatenate(
        [_pad2(ws @ wl, fin_pad, fout_pad),
         _pad2(wn @ wl, fin_pad, fout_pad),
         _pad2(wu @ wl, fin_pad, fout_pad)], axis=0)          # (3*Fp, Cp)
    b = (bs + bn + bu) @ wl + bl                              # (1, out)
    return wcat.astype(jnp.bfloat16), _pad2(b, 1, fout_pad)   # bias kept f32


# ----------------------------------------------------------------------------
# Kernel: one GNN layer.  grid = (row blocks of dst nodes, K blocks over src nodes)
# ----------------------------------------------------------------------------
def _layer_kernel(apply_relu, graph_sum,
                  nvalid_ref,                       # SMEM scalar prefetch: true node count
                  a_ref, e_ref,                     # (TM, TK) bf16 adjacency tiles
                  hs_ref,                           # (TM, Fp) bf16 h rows (self term)
                  hc_ref,                           # (TK, Fp) bf16 h rows (K reduction)
                  w_ref,                            # (3*Fp, Cp) bf16 folded weights
                  b_ref,                            # (1, Cp) f32 folded bias
                  out_ref,                          # (TM, Cp) or (1, Cp)
                  hp_acc, hu_acc):                  # (TM, Fp) f32 scratch accumulators
    i = pl.program_id(0)
    k = pl.program_id(1)
    nk = pl.num_programs(1)

    if graph_sum:
        @pl.when((i == 0) & (k == 0))
        def _():
            out_ref[...] = jnp.zeros_like(out_ref)

    @pl.when(k == 0)
    def _():
        hp_acc[...] = jnp.zeros_like(hp_acc)
        hu_acc[...] = jnp.zeros_like(hu_acc)

    hc = hc_ref[...]
    hp_acc[...] += jnp.dot(e_ref[...], hc, preferred_element_type=jnp.float32)  # u_mul_e+mean
    hu_acc[...] += jnp.dot(a_ref[...], hc, preferred_element_type=jnp.float32)  # copy_u +mean

    @pl.when(k == nk - 1)
    def _():
        feats = jnp.concatenate(
            [hs_ref[...],
             hp_acc[...].astype(jnp.bfloat16),
             hu_acc[...].astype(jnp.bfloat16)], axis=-1)                 # (TM, 3*Fp)
        z = jnp.dot(feats, w_ref[...],
                    preferred_element_type=jnp.float32) + b_ref[...]     # (TM, Cp) f32
        if apply_relu:
            z = jnp.maximum(z, 0.0)
        if graph_sum:
            tm = z.shape[0]
            rows = jax.lax.broadcasted_iota(jnp.int32, (tm, 1), 0) + i * tm
            z = jnp.where(rows < nvalid_ref[0], z, 0.0)   # drop zero-padded nodes
            out_ref[...] += jnp.sum(z, axis=0, keepdims=True)
        else:
            out_ref[...] = z.astype(out_ref.dtype)


def _layer_call(a_bf, e_bf, h_bf, wcat, bias, nvalid, *,
                apply_relu, graph_sum, out_dtype, tm, tk):
    np_ = a_bf.shape[0]
    fp = h_bf.shape[1]
    cp = wcat.shape[1]
    grid = (np_ // tm, np_ // tk)

    if graph_sum:
        out_rows = 1
        out_spec = pl.BlockSpec((1, cp), lambda i, k, nv: (0, 0))
        dims = ("arbitrary", "arbitrary")      # output resident across both axes
    else:
        out_rows = np_
        out_spec = pl.BlockSpec((tm, cp), lambda i, k, nv: (i, 0))
        dims = ("parallel", "arbitrary")       # rows shard across TensorCores

    itemsize = jnp.dtype(out_dtype).itemsize
    cost = pl.CostEstimate(
        flops=int(2 * 2 * np_ * np_ * fp + 2 * np_ * 3 * fp * cp),
        transcendentals=0,
        bytes_accessed=int(2 * np_ * np_ * 2 + 2 * np_ * fp * 2
                           + 3 * fp * cp * 2 + 4 * cp + out_rows * cp * itemsize))

    kernel = functools.partial(_layer_kernel, apply_relu, graph_sum)
    return pl.pallas_call(
        kernel,
        out_shape=jax.ShapeDtypeStruct((out_rows, cp), out_dtype),
        grid_spec=pltpu.PrefetchScalarGridSpec(
            num_scalar_prefetch=1,
            grid=grid,
            in_specs=[
                pl.BlockSpec((tm, tk), lambda i, k, nv: (i, k)),      # A_norm tile
                pl.BlockSpec((tm, tk), lambda i, k, nv: (i, k)),      # E_norm tile
                pl.BlockSpec((tm, fp), lambda i, k, nv: (i, 0)),      # h rows (self)
                pl.BlockSpec((tk, fp), lambda i, k, nv: (k, 0)),      # h rows (reduction)
                pl.BlockSpec((3 * fp, cp), lambda i, k, nv: (0, 0)),  # folded weights
                pl.BlockSpec((1, cp), lambda i, k, nv: (0, 0)),       # folded bias
            ],
            out_specs=out_spec,
            scratch_shapes=[pltpu.VMEM((tm, fp), jnp.float32),
                            pltpu.VMEM((tm, fp), jnp.float32)]),
        compiler_params=pltpu.CompilerParams(
            dimension_semantics=dims,
            vmem_limit_bytes=64 * 1024 * 1024),
        cost_estimate=cost,
    )(nvalid, a_bf, e_bf, h_bf, h_bf, wcat, bias)


# ----------------------------------------------------------------------------
# Wrapper
# ----------------------------------------------------------------------------
def _prepare(a_norm, e_norm, x, params):
    n, in_feats = x.shape
    h_feats = params["ws1"].shape[1]
    num_classes = params["ws2"].shape[1]
    npad, tm, tk = _pick_tiles(n)
    f1p = _round_up(in_feats, _LANE)
    f2p = _round_up(h_feats, _LANE)
    cp = _round_up(num_classes, _LANE)

    prep = {
        "a": _pad2(a_norm, npad, npad).astype(jnp.bfloat16),
        "e": _pad2(e_norm, npad, npad).astype(jnp.bfloat16),
        "x": _pad2(x, npad, f1p).astype(jnp.bfloat16),
        "n": n, "num_classes": num_classes, "tm": tm, "tk": tk,
    }
    prep["wcat1"], prep["b1"] = _fold_layer(
        params["ws1"], params["bs1"], params["wn1"], params["bn1"],
        params["wu1"], params["bu1"], params["wl1"], params["bl1"], f1p, f2p)
    prep["wcat2"], prep["b2"] = _fold_layer(
        params["ws2"], params["bs2"], params["wn2"], params["bn2"],
        params["wu2"], params["bu2"], params["wl2"], params["bl2"], f2p, cp)
    return prep


def gnn_forward(a_norm, e_norm, x, params, *, graph_classification=False):
    prep = _prepare(a_norm, e_norm, x, params)
    nvalid = jnp.array([prep["n"]], dtype=jnp.int32)

    h1 = _layer_call(prep["a"], prep["e"], prep["x"], prep["wcat1"], prep["b1"],
                     nvalid, apply_relu=True, graph_sum=False,
                     out_dtype=jnp.bfloat16, tm=prep["tm"], tk=prep["tk"])
    h2 = _layer_call(prep["a"], prep["e"], h1, prep["wcat2"], prep["b2"],
                     nvalid, apply_relu=False, graph_sum=graph_classification,
                     out_dtype=jnp.float32, tm=prep["tm"], tk=prep["tk"])

    if graph_classification:
        return h2[:, :prep["num_classes"]]                  # (1, num_classes)
    return h2[:prep["n"], :prep["num_classes"]]             # (N, num_classes)


# ----------------------------------------------------------------------------
# References
# ----------------------------------------------------------------------------
def _init_linear(key, in_feat, out_feat):
    """Deterministic stand-in for nn.Linear init; weight returned as (in, out)."""
    kw, kb = jax.random.split(key)
    bound = 1.0 / jnp.sqrt(jnp.float32(in_feat))
    w = jax.random.uniform(kw, (in_feat, out_feat), jnp.float32, -bound, bound)
    b = jax.random.uniform(kb, (1, out_feat), jnp.float32, -bound, bound)
    return w, b


def _reference_forward(a_norm, e_norm, x, p, graph_classification):
    """Pure-f32, un-folded reference matching the PyTorch module's math."""
    def layer(h, ws, bs, wn, bn, wu, bu, wl, bl):
        h_p = e_norm @ h
        h_u = a_norm @ h
        h_total = (h @ ws + bs) + (h_p @ wn + bn) + (h_u @ wu + bu)
        return h_total @ wl + bl
    h = layer(x, p["ws1"], p["bs1"], p["wn1"], p["bn1"], p["wu1"], p["bu1"],
              p["wl1"], p["bl1"])
    h = jnp.maximum(h, 0.0)
    h = layer(h, p["ws2"], p["bs2"], p["wn2"], p["bn2"], p["wu2"], p["bu2"],
              p["wl2"], p["bl2"])
    if graph_classification:
        h = jnp.sum(h, axis=0, keepdims=True)
    return h


def _matched_reference(prep, graph_classification):
    """Same bf16-cast inputs / folded weights as the kernel (tight tolerance check)."""
    def layer(h_bf, wcat, b, relu):
        hp = jnp.dot(prep["e"], h_bf, preferred_element_type=jnp.float32)
        hu = jnp.dot(prep["a"], h_bf, preferred_element_type=jnp.float32)
        feats = jnp.concatenate(
            [h_bf, hp.astype(jnp.bfloat16), hu.astype(jnp.bfloat16)], axis=-1)
        z = jnp.dot(feats, wcat, preferred_element_type=jnp.float32) + b
        return jnp.maximum(z, 0.0) if relu else z
    h1 = layer(prep["x"], prep["wcat1"], prep["b1"], True).astype(jnp.bfloat16)
    h2 = layer(h1, prep["wcat2"], prep["b2"], False)
    h2 = h2[:prep["n"], :prep["num_classes"]]
    if graph_classification:
        h2 = jnp.sum(h2, axis=0, keepdims=True)
    return h2


if __name__ == "__main__":
    key = jax.random.PRNGKey(0)
    N, in_feats, h_feats, num_classes = 8, 16, 32, 4

    keys = jax.random.split(key, 12)

    # Deterministic random graph: adjacency (dst, src) and scalar edge weights.
    adj = (jax.random.uniform(keys[0], (N, N)) > 0.5).astype(jnp.float32)
    edge_w = jax.random.uniform(keys[1], (N, N), jnp.float32, 0.1, 1.0) * adj
    deg = jnp.maximum(adj.sum(axis=1, keepdims=True), 1.0)   # in-degree per dst
    a_norm = adj / deg                                        # mean(copy_u)
    e_norm = edge_w / deg                                     # mean(u_mul_e)

    x = jax.random.normal(keys[2], (N, in_feats), jnp.float32)

    # Layer 1 params (in_feats -> h_feats), Layer 2 params (h_feats -> num_classes)
    params = {}
    params["ws1"], params["bs1"] = _init_linear(keys[3], in_feats, h_feats)
    params["wn1"], params["bn1"] = _init_linear(keys[4], in_feats, h_feats)
    params["wu1"], params["bu1"] = _init_linear(keys[5], in_feats, h_feats)
    params["wl1"], params["bl1"] = _init_linear(keys[6], h_feats, h_feats)
    params["ws2"], params["bs2"] = _init_linear(keys[7], h_feats, num_classes)
    params["wn2"], params["bn2"] = _init_linear(keys[8], h_feats, num_classes)
    params["wu2"], params["bu2"] = _init_linear(keys[9], h_feats, num_classes)
    params["wl2"], params["bl2"] = _init_linear(keys[10], num_classes, num_classes)

    prep = _prepare(a_norm, e_norm, x, params)

    for graph_classification in (True, False):
        out = gnn_forward(a_norm, e_norm, x, params,
                          graph_classification=graph_classification)
        out = jax.block_until_ready(out)

        ref_f32 = _reference_forward(a_norm, e_norm, x, params, graph_classification)
        ref_bf16 = _matched_reference(prep, graph_classification)

        assert out.shape == ref_f32.shape
        # Tight check vs. a reference that uses identical bf16 inputs / folded weights.
        assert jnp.allclose(out, ref_bf16, atol=2e-3, rtol=2e-3), \
            "mismatch vs matched bf16 reference"
        # Loose check vs. the original f32 module math (bf16 rounding tolerance).
        assert jnp.allclose(out, ref_f32, atol=5e-2, rtol=5e-2), \
            "mismatch vs pure-f32 reference"

    print("KERNEL_OK")
</pallas_src>

<mosaic_0001>
module attributes {stable_mosaic.version = 11 : i64} {
  func.func @_layer_kernel(%arg0: i32, %arg1: i32, %arg2: memref<1xi32, #tpu.memory_space<smem>>, %arg3: memref<8x8xbf16, #tpu.memory_space<vmem>>, %arg4: memref<8x8xbf16, #tpu.memory_space<vmem>>, %arg5: memref<8x128xbf16, #tpu.memory_space<vmem>>, %arg6: memref<8x128xbf16, #tpu.memory_space<vmem>>, %arg7: memref<384x128xbf16, #tpu.memory_space<vmem>>, %arg8: memref<1x128xf32, #tpu.memory_space<vmem>>, %arg9: memref<8x128xbf16, #tpu.memory_space<vmem>>, %arg10: memref<8x128xf32, #tpu.memory_space<vmem>>, %arg11: memref<8x128xf32, #tpu.memory_space<vmem>>) attributes {dimension_semantics = [#tpu.dimension_semantics<parallel>, #tpu.dimension_semantics<arbitrary>], iteration_bounds = array<i64: 1, 1>, scalar_prefetch = 1 : i64, scratch_operands = 2 : i64, tpu.core_type = #tpu.core_type<tc>, window_params = [{transform_indices = @transform_0, window_bounds = array<i64: 8, 8>}, {transform_indices = @transform_1, window_bounds = array<i64: 8, 8>}, {transform_indices = @transform_2, window_bounds = array<i64: 8, 128>}, {transform_indices = @transform_3, window_bounds = array<i64: 8, 128>}, {pipeline_mode = #tpu.pipeline_mode<synchronous>, transform_indices = @transform_4, window_bounds = array<i64: 384, 128>}, {pipeline_mode = #tpu.pipeline_mode<synchronous>, transform_indices = @transform_5, window_bounds = array<i64: 1, 128>}, {transform_indices = @transform_6, window_bounds = array<i64: 8, 128>}]} {
    %c0_i32 = arith.constant 0 : i32
    %0 = arith.cmpi eq, %arg1, %c0_i32 : i32
    %1 = arith.extui %0 : i1 to i32
    %c0_i32_0 = arith.constant 0 : i32
    %2 = arith.cmpi ne, %1, %c0_i32_0 : i32
    scf.if %2 {
      %cst_17 = arith.constant 0.000000e+00 : f32
      %17 = vector.broadcast %cst_17 : f32 to vector<8x128xf32>
      %c0_18 = arith.constant 0 : index
      %c0_19 = arith.constant 0 : index
      %18 = vector.load %arg10[%c0_18, %c0_19] : memref<8x128xf32, #tpu.memory_space<vmem>>, vector<8x128xf32>
      tpu.vector_store %arg10[%c0_18, %c0_19], %17 {strides = array<i32>} : memref<8x128xf32, #tpu.memory_space<vmem>>, vector<8x128xf32>,
      %cst_20 = arith.constant 0.000000e+00 : f32
      %19 = vector.broadcast %cst_20 : f32 to vector<8x128xf32>
      %c0_21 = arith.constant 0 : index
      %c0_22 = arith.constant 0 : index
      %20 = vector.load %arg11[%c0_21, %c0_22] : memref<8x128xf32, #tpu.memory_space<vmem>>, vector<8x128xf32>
      tpu.vector_store %arg11[%c0_21, %c0_22], %19 {strides = array<i32>} : memref<8x128xf32, #tpu.memory_space<vmem>>, vector<8x128xf32>,
    } else {
    }
    %c0 = arith.constant 0 : index
    %c0_1 = arith.constant 0 : index
    %3 = vector.load %arg6[%c0, %c0_1] : memref<8x128xbf16, #tpu.memory_space<vmem>>, vector<8x128xbf16>
    %c0_2 = arith.constant 0 : index
    %c0_3 = arith.constant 0 : index
    %4 = vector.load %arg10[%c0_2, %c0_3] : memref<8x128xf32, #tpu.memory_space<vmem>>, vector<8x128xf32>
    %c0_4 = arith.constant 0 : index
    %c0_5 = arith.constant 0 : index
    %5 = vector.load %arg4[%c0_4, %c0_5] : memref<8x8xbf16, #tpu.memory_space<vmem>>, vector<8x8xbf16>
    %cst = arith.constant dense<0.000000e+00> : vector<8x128xf32>
    %6 = tpu.matmul %5, %3, %cst {dimension_numbers = #tpu.dot_dimension_numbers<[1], [0], [0], [1], [0, 0, 1, 1], [], []>} : vector<8x8xbf16>, vector<8x128xbf16>, vector<8x128xf32> -> vector<8x128xf32>
    %7 = arith.addf %4, %6 : vector<8x128xf32>
    %c0_6 = arith.constant 0 : index
    %c0_7 = arith.constant 0 : index
    %8 = vector.load %arg10[%c0_6, %c0_7] : memref<8x128xf32, #tpu.memory_space<vmem>>, vector<8x128xf32>
    tpu.vector_store %arg10[%c0_6, %c0_7], %7 {strides = array<i32>} : memref<8x128xf32, #tpu.memory_space<vmem>>, vector<8x128xf32>,
    %c0_8 = arith.constant 0 : index
    %c0_9 = arith.constant 0 : index
    %9 = vector.load %arg11[%c0_8, %c0_9] : memref<8x128xf32, #tpu.memory_space<vmem>>, vector<8x128xf32>
    %c0_10 = arith.constant 0 : index
    %c0_11 = arith.constant 0 : index
    %10 = vector.load %arg3[%c0_10, %c0_11] : memref<8x8xbf16, #tpu.memory_space<vmem>>, vector<8x8xbf16>
    %cst_12 = arith.constant dense<0.000000e+00> : vector<8x128xf32>
    %11 = tpu.matmul %10, %3, %cst_12 {dimension_numbers = #tpu.dot_dimension_numbers<[1], [0], [0], [1], [0, 0, 1, 1], [], []>} : vector<8x8xbf16>, vector<8x128xbf16>, vector<8x128xf32> -> vector<8x128xf32>
    %12 = arith.addf %9, %11 : vector<8x128xf32>
    %c0_13 = arith.constant 0 : index
    %c0_14 = arith.constant 0 : index
    %13 = vector.load %arg11[%c0_13, %c0_14] : memref<8x128xf32, #tpu.memory_space<vmem>>, vector<8x128xf32>
    tpu.vector_store %arg11[%c0_13, %c0_14], %12 {strides = array<i32>} : memref<8x128xf32, #tpu.memory_space<vmem>>, vector<8x128xf32>,
    %c0_i32_15 = arith.constant 0 : i32
    %14 = arith.cmpi eq, %arg1, %c0_i32_15 : i32
    %15 = arith.extui %14 : i1 to i32
    %c0_i32_16 = arith.constant 0 : i32
    %16 = arith.cmpi ne, %15, %c0_i32_16 : i32
    scf.if %16 {
      %c0_17 = arith.constant 0 : index
      %c0_18 = arith.constant 0 : index
      %17 = vector.load %arg5[%c0_17, %c0_18] : memref<8x128xbf16, #tpu.memory_space<vmem>>, vector<8x128xbf16>
      %c0_19 = arith.constant 0 : index
      %c0_20 = arith.constant 0 : index
      %18 = vector.load %arg10[%c0_19, %c0_20] : memref<8x128xf32, #tpu.memory_space<vmem>>, vector<8x128xf32>
      %19 = arith.truncf %18 : vector<8x128xf32> to vector<8x128xbf16>
      %c0_21 = arith.constant 0 : index
      %c0_22 = arith.constant 0 : index
      %20 = vector.load %arg11[%c0_21, %c0_22] : memref<8x128xf32, #tpu.memory_space<vmem>>, vector<8x128xf32>
      %21 = arith.truncf %20 : vector<8x128xf32> to vector<8x128xbf16>
      %22 = tpu.concatenate %17, %19, %21 in 1 : vector<8x128xbf16>, vector<8x128xbf16>, vector<8x128xbf16> -> vector<8x384xbf16>
      %c0_23 = arith.constant 0 : index
      %c0_24 = arith.constant 0 : index
      %23 = vector.load %arg7[%c0_23, %c0_24] : memref<384x128xbf16, #tpu.memory_space<vmem>>, vector<384x128xbf16>
      %cst_25 = arith.constant dense<0.000000e+00> : vector<8x128xf32>
      %24 = tpu.matmul %22, %23, %cst_25 {dimension_numbers = #tpu.dot_dimension_numbers<[1], [0], [0], [1], [0, 0, 1, 1], [], []>} : vector<8x384xbf16>, vector<384x128xbf16>, vector<8x128xf32> -> vector<8x128xf32>
      %c0_26 = arith.constant 0 : index
      %c0_27 = arith.constant 0 : index
      %25 = vector.load %arg8[%c0_26, %c0_27] : memref<1x128xf32, #tpu.memory_space<vmem>>, vector<1x128xf32>
      %26 = vector.broadcast %25 : vector<1x128xf32> to vector<8x128xf32>
      %27 = arith.addf %24, %26 : vector<8x128xf32>
      %cst_28 = arith.constant 0.000000e+00 : f32
      %28 = vector.broadcast %cst_28 : f32 to vector<8x128xf32>
      %29 = arith.maximumf %27, %28 : vector<8x128xf32>
      %30 = arith.truncf %29 : vector<8x128xf32> to vector<8x128xbf16>
      %c0_29 = arith.constant 0 : index
      %c0_30 = arith.constant 0 : index
      %31 = vector.load %arg9[%c0_29, %c0_30] : memref<8x128xbf16, #tpu.memory_space<vmem>>, vector<8x128xbf16>
      tpu.vector_store %arg9[%c0_29, %c0_30], %30 {strides = array<i32>} : memref<8x128xbf16, #tpu.memory_space<vmem>>, vector<8x128xbf16>,
    } else {
    }
    return
  }
  func.func @transform_0(%arg0: i32, %arg1: i32, %arg2: memref<1xi32, #tpu.memory_space<smem>>) -> (i32, i32) {
    %c0_i32 = arith.constant 0 : i32
    return %arg0, %arg1 : i32, i32
  }
  func.func @transform_1(%arg0: i32, %arg1: i32, %arg2: memref<1xi32, #tpu.memory_space<smem>>) -> (i32, i32) {
    %c0_i32 = arith.constant 0 : i32
    return %arg0, %arg1 : i32, i32
  }
  func.func @transform_2(%arg0: i32, %arg1: i32, %arg2: memref<1xi32, #tpu.memory_space<smem>>) -> (i32, i32) {
    %c0_i32 = arith.constant 0 : i32
    %c0_i32_0 = arith.constant 0 : i32
    return %arg0, %c0_i32 : i32, i32
  }
  func.func @transform_3(%arg0: i32, %arg1: i32, %arg2: memref<1xi32, #tpu.memory_space<smem>>) -> (i32, i32) {
    %c0_i32 = arith.constant 0 : i32
    %c0_i32_0 = arith.constant 0 : i32
    return %arg1, %c0_i32 : i32, i32
  }
  func.func @transform_4(%arg0: i32, %arg1: i32, %arg2: memref<1xi32, #tpu.memory_space<smem>>) -> (i32, i32) {
    %c0_i32 = arith.constant 0 : i32
    %c0_i32_0 = arith.constant 0 : i32
    %c0_i32_1 = arith.constant 0 : i32
    return %c0_i32, %c0_i32_0 : i32, i32
  }
  func.func @transform_5(%arg0: i32, %arg1: i32, %arg2: memref<1xi32, #tpu.memory_space<smem>>) -> (i32, i32) {
    %c0_i32 = arith.constant 0 : i32
    %c0_i32_0 = arith.constant 0 : i32
    %c0_i32_1 = arith.constant 0 : i32
    return %c0_i32, %c0_i32_0 : i32, i32
  }
  func.func @transform_6(%arg0: i32, %arg1: i32, %arg2: memref<1xi32, #tpu.memory_space<smem>>) -> (i32, i32) {
    %c0_i32 = arith.constant 0 : i32
    %c0_i32_0 = arith.constant 0 : i32
    return %arg0, %c0_i32 : i32, i32
  }
}

</mosaic_0001>

<bundles_post_ra>
// kernel: tpu_custom_call.1
= control target key start
LH: loop header
LB: loop body
LE: loop exit
PB: predicated region body
PF: predicated region fallthrough
CT: control target
= control target key end

     0   :  { %13 = vsyncpa [#allocation7], 0  ;;  %s810_s0 = inlined_call_operand.<no memory space> [shape: s32[1], index: 0, kind: input, shape index: {}]   ;;  %s811_s1 = inlined_call_operand.hbm [shape: bf16[8,8], index: 1, kind: input, shape index: {}]   ;;  %s812_s2 = inlined_call_operand.hbm [shape: bf16[8,8], index: 2, kind: input, shape index: {}]   ;;  %s813_s3 = inlined_call_operand.vmem [shape: bf16[8,128], index: 3, kind: input, shape index: {}]   ;;  %s814_s4 = inlined_call_operand.hbm [shape: bf16[8,128], index: 4, kind: input, shape index: {}]   ;;  %s815_s5 = inlined_call_operand.hbm [shape: bf16[384,128], index: 5, kind: input, shape index: {}]   ;;  %s816_s6 = inlined_call_operand.vmem [shape: f32[1,128], index: 6, kind: input, shape index: {}]   ;;  %s817_s7 = inlined_call_operand.hbm [shape: bf16[8,128], index: 7, kind: output, shape index: {}]  }
   0x1   :  { %14 = vsyncpa [#allocation10], 0 }
   0x2   :  { %15 = vsyncpa [#allocation13], 0 }
   0x3   :  { %16 = vsyncpa [#allocation8], 0  ;;  %s724_s23 = smov [#allocation9]   ;;  %s725_s25 = smov [#allocation6]  }
   0x4   :  { %s33_s24 = sshll.u32 %s724_s23, 4  ;;  %s23_s26 = sshll.u32 %s725_s25, 4  ;;  %s34_s24 = int_to_ptr.vmem [resolvable:$true] %s33_s24  ;;  %s24_s26 = int_to_ptr.vmem [resolvable:$true] %s23_s26 }
   0x5   :  { %s624_s27 = scalar_lea.vmem %s34_s24, 64  ;;  %p629_p1 = scmp.lt.s32.totalorder %s34_s24, %s34_s24 }
   0x6   :  { %p625_p0 = scmp.ne.s32.totalorder %s34_s24, %s624_s27  ;;  %p630_p2 = scmp.lt.s32.totalorder %s624_s27, %s624_s27 }
   0x8   :  { %p631_p3 = por %p630_p2, %p629_p1 }
   0xa   :  { %p632_p4 = pnand %p631_p3, %p625_p0 }
   0xc   :  { %635 = shalt.err (!%p632_p4)
}
   0xd   :  { %36 = dma.hbm_to_vmem [thread:$0]  %s812_s2, 64, %s34_s24, [#allocation10]  }
   0xe   :  { %s644_s30 = scalar_lea.vmem %s24_s26, 64  ;;  %p649_p6 = scmp.lt.s32.totalorder %s24_s26, %s24_s26 }
   0xf   :  { %p645_p5 = scmp.ne.s32.totalorder %s24_s26, %s644_s30  ;;  %p650_p7 = scmp.lt.s32.totalorder %s644_s30, %s644_s30 }
  0x11   :  { %p651_p8 = por %p650_p7, %p649_p6 }
  0x13   :  { %p652_p9 = pnand %p651_p8, %p645_p5 }
  0x15   :  { %655 = shalt.err (!%p652_p9)
}
  0x16   :  { %26 = dma.hbm_to_vmem [thread:$0]  %s811_s1, 64, %s24_s26, [#allocation7]  }
  0x17   :  { %s726_s10 = smov [#allocation11]   ;;  %s727_s12 = smov [#allocation12]  }
  0x18   :  { %s45_s11 = sshll.u32 %s726_s10, 4  ;;  %s54_s13 = sshll.u32 %s727_s12, 4  ;;  %s46_s11 = int_to_ptr.vmem [resolvable:$true] %s45_s11  ;;  %s55_s13 = int_to_ptr.vmem [resolvable:$true] %s54_s13 }
  0x19   :  { %s664_s14 = scalar_lea.vmem %s46_s11, 64  ;;  %p669_p11 = scmp.lt.s32.totalorder %s46_s11, %s46_s11 }
  0x1a   :  { %p665_p10 = scmp.ne.s32.totalorder %s46_s11, %s664_s14  ;;  %p670_p12 = scmp.lt.s32.totalorder %s664_s14, %s664_s14 }
  0x1c   :  { %p671_p13 = por %p670_p12, %p669_p11 }
  0x1e   :  { %p672_p0 = pnand %p671_p13, %p665_p10 }
  0x20   :  { %675 = shalt.err (!%p672_p0)
}
  0x21   :  { %48 = dma.hbm_to_vmem [thread:$0]  %s814_s4, 64, %s46_s11, [#allocation10]  }
  0x22   :  { %s684_s16 = scalar_lea.vmem %s55_s13, 3072  ;;  %p689_p2 = scmp.lt.s32.totalorder %s55_s13, %s55_s13 }
  0x23   :  { %p685_p1 = scmp.ne.s32.totalorder %s55_s13, %s684_s16  ;;  %p690_p3 = scmp.lt.s32.totalorder %s684_s16, %s684_s16 }
  0x25   :  { %p691_p4 = por %p690_p3, %p689_p2 }
  0x27   :  { %p692_p5 = pnand %p691_p4, %p685_p1 }
  0x29   :  { %695 = shalt.err (!%p692_p5)
}
  0x2a   :  { %s728_s1 = smov 64   ;;  %s729_s17 = smov 4  }
  0x2b   :  { %60 = dma.hbm_to_vmem [thread:$0]  %s815_s5, 3072, %s55_s13, [#allocation13], %s728_s1, %s728_s1, %s729_s17  }
  0x2c   :  { %716 = dma.done.wait [#allocation7], 64  }
  0x2d   :  { %717 = vsyncadd [#allocation7], 4294967232 }
  0x2e   :  { %718 = dma.done.wait [#allocation10], 128  }
  0x2f   :  { %719 = vsyncadd [#allocation10], 4294967168 }
  0x30   :  { %720 = dma.done.wait [#allocation13], 3072  }
  0x31   :  { %721 = vsyncadd [#allocation13], 4294964224  ;;  %v730_v0 = vmov 0.0   ;;  %vm731_vm0 = vmmov 0   ;;  %vm89_vm1 = vcmask 1043456   ;;  %v592_v5 = vld [vmem:[#allocation12 + $0x78] sm:$0xff]  }
  0x32   :  { %551 = vmatprep.subr.bf16.mxu0 %v730_v0  ;;  %557 = vmatprep.subr.bf16.mxu1 %v730_v0  ;;  %v82_v1 = vld [vmem:[#allocation11] sm:$0xf]  ;;  %v84_v2 = vld [vmem:[#allocation9] sm:$0xf]  ;;  %v136_v3 = vld [vmem:[#allocation6] sm:$0xf] }
  0x33   :  { %553 = vmatprep.mubr.msk.bf16.mxu0 %vm731_vm0, %v730_v0  ;;  %559 = vmatprep.mubr.msk.bf16.mxu1 %vm731_vm0, %v730_v0  ;;  %v91_v4 = vsel %vm89_vm1, %v82_v1, 0  ;;  %vm85_vm2 = vcmask 64512   ;;  %v593_v6 = vld [vmem:[#allocation12 + $0x38] sm:$0xff]   ;;  %v595_v8 = vld [vmem:[#allocation12 + $0x70] sm:$0xff]   ;;  %v598_v11 = vld [vmem:[#allocation12 + $0x68] sm:$0xff]  }
  0x34   :  { %552 = vmatpush3.bf16.msra.mxu0 %v91_v4  ;;  %558 = vmatpush3.bf16.msra.mxu1 %v91_v4  ;;  %v594_v7 = vld [vmem:[#allocation12 + $0xb8] sm:$0xff]   ;;  %v596_v9 = vld [vmem:[#allocation12 + $0x30] sm:$0xff]   ;;  %v599_v12 = vld [vmem:[#allocation12 + $0x28] sm:$0xff]  }
  0x35   :  { %520 = vmatprep.subr.bf16.mxu0 %v592_v5  ;;  %563 = vmatprep.subr.bf16.mxu1 %v730_v0  ;;  %v597_v10 = vld [vmem:[#allocation12 + $0xb0] sm:$0xff]   ;;  %v600_v13 = vld [vmem:[#allocation12 + $0xa8] sm:$0xff]   ;;  %v601_v14 = vld [vmem:[#allocation12 + $0x60] sm:$0xff]  }
  0x36   :  { %v602_v15 = vld [vmem:[#allocation12 + $0x20] sm:$0xff]   ;;  %v604_v17 = vld [vmem:[#allocation12 + $0x58] sm:$0xff]   ;;  %v607_v20 = vld [vmem:[#allocation12 + $0x50] sm:$0xff]  }
  0x37   :  { %554 = vmatmul.mubr.msk.bf16.vlgmr.msra.gmra.mxu0 %vm85_vm2, %v84_v2  ;;  %560 = vmatmul.mubr.msk.bf16.vlgmr.msra.gmra.mxu1 %vm85_vm2, %v136_v3  ;;  %v603_v16 = vld [vmem:[#allocation12 + $0xa0] sm:$0xff]   ;;  %v605_v18 = vld [vmem:[#allocation12 + $0x18] sm:$0xff]   ;;  %v608_v21 = vld [vmem:[#allocation12 + $0x10] sm:$0xff]  }
  0x38   :  { %521 = vmatpush3.bf16.msra.mxu0 %v593_v6  ;;  %564 = vmatpush3.bf16.msra.mxu1 %v594_v7  ;;  %v606_v19 = vld [vmem:[#allocation12 + $0x98] sm:$0xff]   ;;  %v609_v22 = vld [vmem:[#allocation12 + $0x90] sm:$0xff]   ;;  %v610_v23 = vld [vmem:[#allocation12 + $0x48] sm:$0xff]  }
  0x39   :  { %522 = vmatprep.subr.bf16.mxu0 %v595_v8  ;;  %565 = vmatprep.subr.bf16.mxu1 %v730_v0  ;;  %v611_v24 = vld [vmem:[#allocation12 + $0x8] sm:$0xff]   ;;  %v613_v26 = vld [vmem:[#allocation12 + $0x40] sm:$0xff]   ;;  %v185_v33 = vld [vmem:[%s813_s3] sm:$0xf]  ;;  %s732_s3 = smov [#allocation14]  }
  0x3a   :  { %579 = vmatprep.mubr.msk.bf16.mxu1 %vm731_vm0, %v730_v0  ;;  %v612_v25 = vld [vmem:[#allocation12 + $0x88] sm:$0xff]   ;;  %v614_v27 = vld [vmem:[#allocation12] sm:$0xff]   ;;  %v491_v43 = vld [vmem:[%s816_s6] ss:$0 sm:$0xff]  ;;  %s478_s22 = sshll.u32 %s732_s3, 4  ;;  %s479_s22 = int_to_ptr.vmem [resolvable:$true] %s478_s22 }
  0x3b   :  { %v615_v28 = vld [vmem:[#allocation12 + $0x80] sm:$0xff]   ;;  %s696_s0 = scalar_lea.vmem %s479_s22, 64  ;;  %p701_p7 = scmp.lt.s32.totalorder %s479_s22, %s479_s22 }
  0x3c   :  { %523 = vmatpush3.bf16.msra.mxu0 %v596_v9  ;;  %566 = vmatpush3.bf16.msra.mxu1 %v597_v10  ;;  %p697_p6 = scmp.ne.s32.totalorder %s479_s22, %s696_s0  ;;  %p702_p8 = scmp.lt.s32.totalorder %s696_s0, %s696_s0 }
  0x3d   :  { %524 = vmatprep.subr.bf16.mxu0 %v598_v11  ;;  %567 = vmatprep.subr.bf16.mxu1 %v730_v0 }
  0x3e   :  { %p703_p9 = por %p702_p8, %p701_p7 }
  0x40   :  { %525 = vmatpush3.bf16.msra.mxu0 %v599_v12  ;;  %568 = vmatpush3.bf16.msra.mxu1 %v600_v13  ;;  %p704_p10 = pnand %p703_p9, %p697_p6 }
  0x41   :  { %526 = vmatprep.subr.bf16.mxu0 %v601_v14  ;;  %569 = vmatprep.subr.bf16.mxu1 %v730_v0 }
  0x44   :  { %527 = vmatpush3.bf16.msra.mxu0 %v602_v15  ;;  %570 = vmatpush3.bf16.msra.mxu1 %v603_v16 }
  0x45   :  { %528 = vmatprep.subr.bf16.mxu0 %v604_v17  ;;  %571 = vmatprep.subr.bf16.mxu1 %v730_v0 }
  0x48   :  { %529 = vmatpush3.bf16.msra.mxu0 %v605_v18  ;;  %572 = vmatpush3.bf16.msra.mxu1 %v606_v19 }
  0x49   :  { %530 = vmatprep.subr.bf16.mxu0 %v607_v20  ;;  %573 = vmatprep.subr.bf16.mxu1 %v730_v0 }
  0x4c   :  { %531 = vmatpush3.bf16.msra.mxu0 %v608_v21  ;;  %574 = vmatpush3.bf16.msra.mxu1 %v609_v22 }
  0x4d   :  { %532 = vmatprep.subr.bf16.mxu0 %v610_v23  ;;  %575 = vmatprep.subr.bf16.mxu1 %v730_v0 }
  0x50   :  { %533 = vmatpush3.bf16.msra.mxu0 %v611_v24  ;;  %576 = vmatpush3.bf16.msra.mxu1 %v612_v25 }
  0x51   :  { %577 = vmatprep.subr.bf16.mxu1 %v730_v0  ;;  %534 = vmatprep.subr.bf16.mxu0 %v613_v26 }
  0x54   :  { %535 = vmatpush3.bf16.msra.mxu0 %v614_v27  ;;  %578 = vmatpush3.bf16.msra.mxu1 %v615_v28 }
  0xf7   :  { %v127_v29 = vpop.f32.mrf.mxu0  ;;  %v174_v30 = vpop.f32.mrf.mxu1 }
  0xf8   :  { %v187_v31 = vpack.c.bf16 %v127_v29, %v127_v29  ;;  %v189_v32 = vpack.c.bf16 %v174_v30, %v174_v30 }
  0xf9   :  { %v555_v34 = vpop.f32.mrf.mxu0  ;;  %v561_v35 = vpop.f32.mrf.mxu1 }
  0xfa   :  { %421 = vmatprep.mubr.bf16.mxu0 %v187_v31  ;;  %580 = vmatmul.mubr.bf16.vlgmr.msra.gmra.mxu1 %v189_v32 }
  0xfb   :  { %v130_v36 = vpop.f32.mrf.mxu0  ;;  %422 = vmatmul.mubr.bf16.vlgmr.msra.gmra.mxu0 %v185_v33  ;;  %v177_v37 = vpop.f32.mrf.mxu1 }
  0xfd   :  { %v556_v38 = vpop.f32.mrf.mxu0  ;;  %v562_v39 = vpop.f32.mrf.mxu1 }
 0x1ba   :  { %v463_v40 = vpop.f32.mrf.mxu1 }
 0x1bb   :  { %v536_v41 = vpop.f32.mrf.mxu0 }
 0x1bc   :  { %v581_v42 = vpop.f32.mrf.mxu1 }
 0x1bd   :  { %v537_v44 = vpop.f32.mrf.mxu0 }
 0x1be   :  { %v538_v45 = vadd.f32 %v537_v44, %v536_v41  ;;  %v466_v46 = vpop.f32.mrf.mxu1 }
 0x1bf   :  { %v539_v47 = vpop.f32.mrf.mxu0 }
 0x1c0   :  { %v424_v48 = vadd.f32 %v538_v45, %v491_v43  ;;  %v582_v49 = vpop.f32.mrf.mxu1 }
 0x1c1   :  { %v540_v50 = vpop.f32.mrf.mxu0 }
 0x1c2   :  { %v464_v51 = vadd.f32 %v463_v40, %v424_v48 }
 0x1c4   :  { %v469_v52 = vmax.f32 %v464_v51, 0.0 }
 0x1c6   :  { %v470_v53 = vpack.c.bf16 %v469_v52, %v469_v52 }
 0x1c8   :  { %471 = vst [vmem:[#allocation14] sm:$0xf] %v470_v53 }
 0x1c9   :  { %707 = shalt.err (!%p704_p10)
}
 0x1ca   :  { %481 = dma.vmem_to_hbm [thread:$0]  %s479_s22, 64, %s817_s7, [#allocation8]  }
 0x1cb   :  { %722 = dma.done.wait [#allocation8], 64  }
 0x1cc   :  { %723 = vsyncadd [#allocation8], 4294967232 }
 0x1cd   :  { %485 = vsyncpa [#allocation7], 1 }
 0x1ce   :  { %486 = vsyncpa [#allocation10], 1 }
 0x1cf   :  { %487 = vsyncpa [#allocation13], 1 }
 0x1d0   :  { %488 = vsyncpa [#allocation8], 1 }

</bundles_post_ra>
